<compile_context>
chip_gen: v6e
topology: v6e:2x2x1
jax: 0.10.0
libtpu: 0.0.40
codegen_flags: <defaults>
</compile_context>

<pallas_src>
import functools

import jax
import jax.numpy as jnp
from jax.experimental import pallas as pl
from jax.experimental.pallas import tpu as pltpu


def _self_attention_kernel(h_ref, w1_ref, w2_ref, out_ref, *,
                           block_batch, dense_out, approx_reciprocal):
    # h_ref:   (TB, D, S)   h transposed so seq is on the lane axis
    # w1_ref:  (da, D)      ws1.weight (PyTorch (out, in) layout)
    # w2_ref:  (r, da)      ws2.weight (PyTorch (out, in) layout)
    # out_ref: (TB*r, S) if dense_out else (TB, r, S)
    r = w2_ref.shape[0]
    w1 = w1_ref[...]                       # hoisted once per grid step
    w2 = w2_ref[...]

    # Bounded static unroll (block_batch <= 8 by construction): the op is
    # HBM-bandwidth-bound, so per-batch MXU calls (N = S) are not the
    # bottleneck, and a small unroll keeps vreg live ranges tame.
    for b in range(block_batch):
        h_b = h_ref[b]                                                   # (D, S)
        # ws1 + tanh: (da, D) @ (D, S) -> (da, S), f32 accumulation.
        z = jnp.tanh(jnp.dot(w1, h_b, preferred_element_type=jnp.float32))
        # ws2: cast z down to the weight dtype (bf16 by default) for full MXU
        # rate; keep f32 accumulation.
        s = jnp.dot(w2, z.astype(w2.dtype), preferred_element_type=jnp.float32)

        # softmax over the seq axis (= last / lane axis here), in f32.
        m = jnp.max(s, axis=-1, keepdims=True)
        e = jnp.exp(s - m)
        denom = jnp.sum(e, axis=-1, keepdims=True)
        if approx_reciprocal:
            attn = e * pl.reciprocal(denom, approx=True)                 # EUP slot
        else:
            attn = e / denom                                             # exact rows-sum-to-1
        attn = attn.astype(out_ref.dtype)                                # (r, S)

        if dense_out:
            # Sublane-dense store: rows [b*r, b*r+r) of a (TB*r, S) block.
            out_ref[pl.ds(b * r, r), :] = attn
        else:
            out_ref[b] = attn


def _largest_divisor_leq(n, cap):
    cap = int(max(1, min(cap, n)))
    for d in range(cap, 0, -1):
        if n % d == 0:
            return d
    return 1


def self_attention(h, w1, w2, *, block_batch=None, compute_dtype=jnp.bfloat16,
                   approx_reciprocal=True):
    """Pallas TPU SelfAttention forward.

    h:  (B, S, D)   activations
    w1: (da, D)     ws1.weight (PyTorch (out, in) layout)
    w2: (r, da)     ws2.weight (PyTorch (out, in) layout)
    returns (B, r, S) == softmax(ws2(tanh(ws1(h))), dim=1).permute(0, 2, 1)

    block_batch (if given) must divide B.  compute_dtype=None keeps h.dtype.
    approx_reciprocal=True uses the EUP approximate reciprocal in the softmax
    divide (rows sum to ~1); set False for exact normalization.
    """
    B, S, D = h.shape
    da, D_w = w1.shape
    r, da_w = w2.shape
    if D_w != D or da_w != da:
        raise ValueError("weight shapes inconsistent with h")

    out_dtype = h.dtype
    if compute_dtype is None:
        compute_dtype = h.dtype

    # Single fused XLA pass: transpose (seq -> lane axis) + dtype cast.  With
    # allow_input_fusion below, XLA may fuse this producer into the kernel's
    # operand rather than materializing an extra HBM copy.
    h_t = jnp.transpose(h, (0, 2, 1)).astype(compute_dtype)   # (B, D, S)
    w1c = w1.astype(compute_dtype)
    w2c = w2.astype(compute_dtype)

    if block_batch is None:
        itemsize = jnp.dtype(compute_dtype).itemsize
        bytes_per_b = S * D * itemsize
        cap = 8                                                # bound the in-kernel unroll
        cap = min(cap, max(1, (2 * 1024 * 1024) // max(1, bytes_per_b)))  # ~2 MiB h block
        if B >= 4:
            cap = min(cap, max(1, B // 4))                     # keep >= 4 pipelined steps
        block_batch = _largest_divisor_leq(B, cap)
    if B % block_batch != 0:
        raise ValueError(f"block_batch={block_batch} must divide batch={B}")
    grid = (B // block_batch,)

    # Sublane-dense output layout when legal (no r<8 padding on stores).
    dense_out = ((block_batch * r) % 8 == 0) or (block_batch == B)
    if dense_out:
        out_shape = jax.ShapeDtypeStruct((B * r, S), out_dtype)
        out_spec = pl.BlockSpec((block_batch * r, S), lambda i: (i, 0))
    else:
        out_shape = jax.ShapeDtypeStruct((B, r, S), out_dtype)
        out_spec = pl.BlockSpec((block_batch, r, S), lambda i: (i, 0, 0))

    kernel = functools.partial(
        _self_attention_kernel,
        block_batch=block_batch,
        dense_out=dense_out,
        approx_reciprocal=approx_reciprocal,
    )

    out = pl.pallas_call(
        kernel,
        out_shape=out_shape,
        grid_spec=pltpu.PrefetchScalarGridSpec(
            num_scalar_prefetch=0,
            grid=grid,
            in_specs=[
                pl.BlockSpec((block_batch, D, S), lambda i: (i, 0, 0)),
                pl.BlockSpec((da, D), lambda i: (0, 0)),
                pl.BlockSpec((r, da), lambda i: (0, 0)),
            ],
            out_specs=out_spec,
        ),
        compiler_params=pltpu.CompilerParams(
            dimension_semantics=("parallel",),
            vmem_limit_bytes=40 * 1024 * 1024,        # safe on v5e/v6e/v7x
            allow_input_fusion=[True, False, False],  # let XLA fuse the h transpose/cast
        ),
    )(h_t, w1c, w2c)

    if dense_out:
        out = out.reshape(B, r, S)   # free row-major reshape
    return out


def _reference(h, w1, w2):
    # pure-JAX (f32) reference of the PyTorch forward
    z = jnp.tanh(jnp.einsum("bsd,ad->bsa", h, w1))   # ws1 + tanh, (B, S, da)
    s = jnp.einsum("bsa,ra->bsr", z, w2)             # ws2,        (B, S, r)
    attn = jax.nn.softmax(s, axis=1)                 # softmax over seq
    return jnp.transpose(attn, (0, 2, 1))            # (B, r, S)


def _make_inputs(key, B, S, D, DA, R):
    kh, k1, k2 = jax.random.split(key, 3)
    h = jax.random.normal(kh, (B, S, D), dtype=jnp.float32)
    # nn.Linear-style uniform(-1/sqrt(in), 1/sqrt(in)) init (deterministic)
    w1 = jax.random.uniform(k1, (DA, D), jnp.float32,
                            minval=-1.0 / (D ** 0.5), maxval=1.0 / (D ** 0.5))
    w2 = jax.random.uniform(k2, (R, DA), jnp.float32,
                            minval=-1.0 / (DA ** 0.5), maxval=1.0 / (DA ** 0.5))
    return h, w1, w2


if __name__ == "__main__":
    key = jax.random.PRNGKey(0)
    k_small, k_big = jax.random.split(key)

    # --- Test 1: module-scale shapes, f32 compute path (tight tolerance) ---
    B, S, D, DA, R = 2, 8, 32, 16, 4
    h, w1, w2 = _make_inputs(k_small, B, S, D, DA, R)
    ref = _reference(h, w1, w2)

    out_f32 = self_attention(h, w1, w2, compute_dtype=jnp.float32)
    jax.block_until_ready(out_f32)
    assert out_f32.shape == (B, R, S)
    assert jnp.allclose(out_f32, ref, atol=1e-3, rtol=1e-3), "f32 kernel mismatch"

    # --- Test 2: same shapes, default bf16 compute path ---
    out_bf16 = self_attention(h, w1, w2)     # bf16 h/w, f32 accumulation/softmax
    jax.block_until_ready(out_bf16)
    assert out_bf16.shape == (B, R, S)
    assert jnp.allclose(out_bf16.astype(jnp.float32), ref, atol=2e-2, rtol=2e-2), \
        "bf16 kernel mismatch"

    # --- Test 3: larger shapes exercising the tiled / multi-step grid path ---
    B2, S2, D2, DA2, R2 = 8, 256, 128, 64, 4
    h2, w12, w22 = _make_inputs(k_big, B2, S2, D2, DA2, R2)
    ref2 = _reference(h2, w12, w22)

    out2 = self_attention(h2, w12, w22)      # auto block_batch=2 -> grid of 4 steps
    jax.block_until_ready(out2)
    assert out2.shape == (B2, R2, S2)
    assert jnp.allclose(out2.astype(jnp.float32), ref2, atol=2e-2, rtol=2e-2), \
        "tiled bf16 kernel mismatch"

    print("KERNEL_OK")
</pallas_src>

<mosaic_0001>
module attributes {stable_mosaic.version = 11 : i64} {
  func.func @_self_attention_kernel(%arg0: i32, %arg1: memref<2x32x8xf32, #tpu.memory_space<vmem>>, %arg2: memref<16x32xf32, #tpu.memory_space<vmem>>, %arg3: memref<4x16xf32, #tpu.memory_space<vmem>>, %arg4: memref<8x8xf32, #tpu.memory_space<vmem>>) attributes {dimension_semantics = [#tpu.dimension_semantics<parallel>], iteration_bounds = array<i64: 1>, scalar_prefetch = 0 : i64, scratch_operands = 0 : i64, tpu.core_type = #tpu.core_type<tc>, window_params = [{transform_indices = @transform_0, window_bounds = array<i64: 2, 32, 8>}, {pipeline_mode = #tpu.pipeline_mode<synchronous>, transform_indices = @transform_1, window_bounds = array<i64: 16, 32>}, {pipeline_mode = #tpu.pipeline_mode<synchronous>, transform_indices = @transform_2, window_bounds = array<i64: 4, 16>}, {transform_indices = @transform_3, window_bounds = array<i64: 8, 8>}]} {
    %c0 = arith.constant 0 : index
    %c0_0 = arith.constant 0 : index
    %0 = vector.load %arg2[%c0, %c0_0] : memref<16x32xf32, #tpu.memory_space<vmem>>, vector<16x32xf32>
    %c0_1 = arith.constant 0 : index
    %c0_2 = arith.constant 0 : index
    %1 = vector.load %arg3[%c0_1, %c0_2] : memref<4x16xf32, #tpu.memory_space<vmem>>, vector<4x16xf32>
    %c0_3 = arith.constant 0 : index
    %c0_4 = arith.constant 0 : index
    %c0_5 = arith.constant 0 : index
    %2 = vector.load %arg1[%c0_3, %c0_4, %c0_5] : memref<2x32x8xf32, #tpu.memory_space<vmem>>, vector<1x32x8xf32>
    %3 = vector.shape_cast %2 : vector<1x32x8xf32> to vector<32x8xf32>
    %cst = arith.constant dense<0.000000e+00> : vector<16x8xf32>
    %4 = tpu.matmul %0, %3, %cst {dimension_numbers = #tpu.dot_dimension_numbers<[1], [0], [0], [1], [0, 0, 1, 1], [], []>} : vector<16x32xf32>, vector<32x8xf32>, vector<16x8xf32> -> vector<16x8xf32>
    %5 = math.tanh %4 : vector<16x8xf32>
    %cst_6 = arith.constant dense<0.000000e+00> : vector<4x8xf32>
    %6 = tpu.matmul %1, %5, %cst_6 {dimension_numbers = #tpu.dot_dimension_numbers<[1], [0], [0], [1], [0, 0, 1, 1], [], []>} : vector<4x16xf32>, vector<16x8xf32>, vector<4x8xf32> -> vector<4x8xf32>
    %cst_7 = arith.constant dense<0xFF800000> : vector<4xf32>
    %7 = vector.multi_reduction <maximumf>, %6, %cst_7 [1] : vector<4x8xf32> to vector<4xf32>
    %8 = vector.shape_cast %7 : vector<4xf32> to vector<4x1xf32>
    %9 = vector.broadcast %8 : vector<4x1xf32> to vector<4x8xf32>
    %10 = arith.subf %6, %9 : vector<4x8xf32>
    %11 = math.exp %10 : vector<4x8xf32>
    %cst_8 = arith.constant dense<0.000000e+00> : vector<4xf32>
    %12 = vector.multi_reduction <add>, %11, %cst_8 [1] : vector<4x8xf32> to vector<4xf32>
    %13 = vector.shape_cast %12 : vector<4xf32> to vector<4x1xf32>
    %14 = tpu.reciprocal %13 {approx = true} : vector<4x1xf32> -> vector<4x1xf32>
    %15 = vector.broadcast %14 : vector<4x1xf32> to vector<4x8xf32>
    %16 = arith.mulf %11, %15 : vector<4x8xf32>
    %c0_9 = arith.constant 0 : index
    %c0_10 = arith.constant 0 : index
    %17 = vector.load %arg4[%c0_9, %c0_10] : memref<8x8xf32, #tpu.memory_space<vmem>>, vector<4x8xf32>
    tpu.vector_store %arg4[%c0_9, %c0_10], %16 {strides = array<i32>} : memref<8x8xf32, #tpu.memory_space<vmem>>, vector<4x8xf32>,
    %c1 = arith.constant 1 : index
    %c0_11 = arith.constant 0 : index
    %c0_12 = arith.constant 0 : index
    %18 = vector.load %arg1[%c1, %c0_11, %c0_12] : memref<2x32x8xf32, #tpu.memory_space<vmem>>, vector<1x32x8xf32>
    %19 = vector.shape_cast %18 : vector<1x32x8xf32> to vector<32x8xf32>
    %cst_13 = arith.constant dense<0.000000e+00> : vector<16x8xf32>
    %20 = tpu.matmul %0, %19, %cst_13 {dimension_numbers = #tpu.dot_dimension_numbers<[1], [0], [0], [1], [0, 0, 1, 1], [], []>} : vector<16x32xf32>, vector<32x8xf32>, vector<16x8xf32> -> vector<16x8xf32>
    %21 = math.tanh %20 : vector<16x8xf32>
    %cst_14 = arith.constant dense<0.000000e+00> : vector<4x8xf32>
    %22 = tpu.matmul %1, %21, %cst_14 {dimension_numbers = #tpu.dot_dimension_numbers<[1], [0], [0], [1], [0, 0, 1, 1], [], []>} : vector<4x16xf32>, vector<16x8xf32>, vector<4x8xf32> -> vector<4x8xf32>
    %cst_15 = arith.constant dense<0xFF800000> : vector<4xf32>
    %23 = vector.multi_reduction <maximumf>, %22, %cst_15 [1] : vector<4x8xf32> to vector<4xf32>
    %24 = vector.shape_cast %23 : vector<4xf32> to vector<4x1xf32>
    %25 = vector.broadcast %24 : vector<4x1xf32> to vector<4x8xf32>
    %26 = arith.subf %22, %25 : vector<4x8xf32>
    %27 = math.exp %26 : vector<4x8xf32>
    %cst_16 = arith.constant dense<0.000000e+00> : vector<4xf32>
    %28 = vector.multi_reduction <add>, %27, %cst_16 [1] : vector<4x8xf32> to vector<4xf32>
    %29 = vector.shape_cast %28 : vector<4xf32> to vector<4x1xf32>
    %30 = tpu.reciprocal %29 {approx = true} : vector<4x1xf32> -> vector<4x1xf32>
    %31 = vector.broadcast %30 : vector<4x1xf32> to vector<4x8xf32>
    %32 = arith.mulf %27, %31 : vector<4x8xf32>
    %c4 = arith.constant 4 : index
    %c0_17 = arith.constant 0 : index
    %33 = vector.load %arg4[%c4, %c0_17] : memref<8x8xf32, #tpu.memory_space<vmem>>, vector<4x8xf32>
    tpu.vector_store %arg4[%c4, %c0_17], %32 {strides = array<i32>} : memref<8x8xf32, #tpu.memory_space<vmem>>, vector<4x8xf32>,
    return
  }
  func.func @transform_0(%arg0: i32) -> (i32, i32, i32) {
    %c0_i32 = arith.constant 0 : i32
    %c0_i32_0 = arith.constant 0 : i32
    %c0_i32_1 = arith.constant 0 : i32
    return %arg0, %c0_i32, %c0_i32_0 : i32, i32, i32
  }
  func.func @transform_1(%arg0: i32) -> (i32, i32) {
    %c0_i32 = arith.constant 0 : i32
    %c0_i32_0 = arith.constant 0 : i32
    %c0_i32_1 = arith.constant 0 : i32
    return %c0_i32, %c0_i32_0 : i32, i32
  }
  func.func @transform_2(%arg0: i32) -> (i32, i32) {
    %c0_i32 = arith.constant 0 : i32
    %c0_i32_0 = arith.constant 0 : i32
    %c0_i32_1 = arith.constant 0 : i32
    return %c0_i32, %c0_i32_0 : i32, i32
  }
  func.func @transform_3(%arg0: i32) -> (i32, i32) {
    %c0_i32 = arith.constant 0 : i32
    %c0_i32_0 = arith.constant 0 : i32
    return %arg0, %c0_i32 : i32, i32
  }
}

</mosaic_0001>

<bundles_post_ra>
// kernel: tpu_custom_call.1
= control target key start
LH: loop header
LB: loop body
LE: loop exit
PB: predicated region body
PF: predicated region fallthrough
CT: control target
= control target key end

     0   :  { %vm22_vm0 = vcmask 261120   ;;  %s547_s0 = inlined_call_operand.vmem [shape: f32[2,32,8], index: 0, kind: input, shape index: {}]   ;;  %s548_s1 = inlined_call_operand.vmem [shape: f32[16,32], index: 1, kind: input, shape index: {}]   ;;  %s549_s2 = inlined_call_operand.vmem [shape: f32[4,16], index: 2, kind: input, shape index: {}]   ;;  %s550_s3 = inlined_call_operand.hbm [shape: f32[8,8], index: 3, kind: output, shape index: {}]  }
   0x1   :  { %v21_v0 = vld [vmem:[%s547_s0 + $0x18] sm:$0xff]  ;;  %v20_v1 = vld [vmem:[%s547_s0 + $0x10] sm:$0xff]  ;;  %v15_v2 = vld [vmem:[%s548_s1] sm:$0xff] }
   0x2   :  { %399 = vmatprep.subr.mxu0 %v21_v0  ;;  %v19_v3 = vld [vmem:[%s547_s0 + $0x8] sm:$0xff]  ;;  %407 = vmatprep.mubr.msk.f32.mxu0 %vm22_vm0, %v15_v2 }
   0x3   :  { %400 = vmatpush3.msra.mxu0 %v21_v0 }
   0x4   :  { %8 = vsyncpa [#allocation3], 0  ;;  %401 = vmatprep.subr.mxu0 %v20_v1  ;;  %v18_v4 = vld [vmem:[%s547_s0] sm:$0xff]  ;;  %v16_v5 = vld [vmem:[%s548_s1 + $0x8] sm:$0xff]  ;;  %v476_v6 = vmov 0.0   ;;  %vm477_vm1 = vmmov 0  }
   0x5   :  { %402 = vmatpush3.msra.mxu0 %v20_v1  ;;  %410 = vmatprep.subr.mxu1 %v476_v6  ;;  %v17_v10 = vld [vmem:[%s549_s2] sm:$0xf]  ;;  %vm106_vm2 = vcmask 130048   ;;  %v377_v11 = vld [vmem:[%s547_s0 + $0x38] sm:$0xff]  ;;  %v376_v13 = vld [vmem:[%s547_s0 + $0x30] sm:$0xff]  ;;  %vm180_vm3 = vcmask 60416  }
   0x6   :  { %403 = vmatprep.subr.mxu0 %v19_v3  ;;  %414 = vmatprep.mubr.msk.f32.mxu1 %vm477_vm1, %v476_v6  ;;  %v375_v14 = vld [vmem:[%s547_s0 + $0x28] sm:$0xff]  ;;  %v374_v15 = vld [vmem:[%s547_s0 + $0x20] sm:$0xff]  ;;  %s478_s0 = smov [#allocation2]  }
   0x7   :  { %404 = vmatpush3.msra.mxu0 %v19_v3  ;;  %s363_s5 = sshll.u32 %s478_s0, 4  ;;  %s364_s5 = int_to_ptr.vmem [resolvable:$true] %s363_s5 }
   0x8   :  { %405 = vmatprep.subr.mxu0 %v18_v4  ;;  %s454_s6 = scalar_lea.vmem %s364_s5, 128  ;;  %p459_p1 = scmp.lt.s32.totalorder %s364_s5, %s364_s5 }
   0x9   :  { %406 = vmatpush3.msra.mxu0 %v18_v4  ;;  %p455_p0 = scmp.ne.s32.totalorder %s364_s5, %s454_s6  ;;  %p460_p2 = scmp.lt.s32.totalorder %s454_s6, %s454_s6 }
   0xa   :  { %408 = vmatmul.mubr.msk.f32.vlgmr.msra.gmra.mxu0 %vm22_vm0, %v16_v5  ;;  %428 = vmatprep.subr.mxu0 %v476_v6 }
   0xb   :  { %432 = vmatprep.mubr.msk.f32.mxu0 %vm477_vm1, %v476_v6  ;;  %p461_p3 = por %p460_p2, %p459_p1 }
   0xd   :  { %p462_p4 = pnand %p461_p3, %p455_p0 }
  0xca   :  { %v409_v7 = vpop.f32.mrf.mxu0 }
  0xcb   :  { %438 = vtanh.f32 %v409_v7 }
  0xcc   :  { %v95_v8 = vpop.f32.mrf.mxu0 }
  0xcd   :  { %440 = vtanh.f32 %v95_v8 }
  0xd8   :  { %v439_v9 = vpop.eup %438 }
  0xd9   :  { %411 = vmatpush3.msra.mxu1 %v439_v9 }
  0xda   :  { %v441_v12 = vpop.eup %440  ;;  %412 = vmatprep.subr.mxu1 %v476_v6 }
  0xdb   :  { %413 = vmatpush3.msra.mxu1 %v441_v12 }
  0xdc   :  { %415 = vmatmul.mubr.msk.f32.vlgmr.msra.gmra.mxu1 %vm106_vm2, %v17_v10  ;;  %417 = vmatprep.subr.mxu1 %v377_v11 }
  0xdd   :  { %418 = vmatpush3.msra.mxu1 %v377_v11  ;;  %425 = vmatprep.mubr.msk.f32.mxu1 %vm22_vm0, %v15_v2 }
  0xde   :  { %419 = vmatprep.subr.mxu1 %v376_v13 }
  0xdf   :  { %420 = vmatpush3.msra.mxu1 %v376_v13 }
  0xe0   :  { %421 = vmatprep.subr.mxu1 %v375_v14 }
  0xe1   :  { %422 = vmatpush3.msra.mxu1 %v375_v14 }
  0xe2   :  { %423 = vmatprep.subr.mxu1 %v374_v15 }
  0xe3   :  { %424 = vmatpush3.msra.mxu1 %v374_v15 }
  0xe4   :  { %426 = vmatmul.mubr.msk.f32.vlgmr.msra.gmra.mxu1 %vm22_vm0, %v16_v5 }
 0x19c   :  { %v176_v16 = vpop.f32.mrf.mxu1 }
 0x19d   :  { %v181_v17 = vsel %vm180_vm3, %v176_v16, -inf }
 0x19e   :  { %182 = vmax.xlane.f32.xlu0 %v181_v17  ;;  %v416_v18 = vpop.f32.mrf.mxu1 }
 0x1a4   :  { %v427_v19 = vpop.f32.mrf.mxu1 }
 0x1a5   :  { %442 = vtanh.f32 %v427_v19 }
 0x1a6   :  { %v264_v20 = vpop.f32.mrf.mxu1 }
 0x1a7   :  { %444 = vtanh.f32 %v264_v20 }
 0x1b2   :  { %v443_v21 = vpop.eup %442 }
 0x1b3   :  { %429 = vmatpush3.msra.mxu0 %v443_v21 }
 0x1b4   :  { %v445_v22 = vpop.eup %444  ;;  %430 = vmatprep.subr.mxu0 %v476_v6 }
 0x1b5   :  { %431 = vmatpush3.msra.mxu0 %v445_v22 }
 0x1b6   :  { %433 = vmatmul.mubr.msk.f32.vlgmr.msra.gmra.mxu0 %vm106_vm2, %v17_v10 }
 0x227   :  { %v183_v23 = vpop.xlane.xlu0 %182 }
 0x228   :  { %v184_v24 = vsub.f32 %v176_v16, %v183_v23 }
 0x22a   :  { %v185_v25 = vmul.f32 1.442695, %v184_v24 }
 0x22c   :  { %446 = vpow2.f32 %v185_v25 }
 0x239   :  { %v447_v26 = vpop.eup %446 }
 0x23a   :  { %v187_v27 = vsel %vm180_vm3, %v447_v26, 0.0 }
 0x23b   :  { %188 = vadd.xlane.f32.xlu1 %v187_v27 }
 0x276   :  { %v341_v28 = vpop.f32.mrf.mxu0 }
 0x277   :  { %v345_v29 = vsel %vm180_vm3, %v341_v28, -inf }
 0x278   :  { %346 = vmax.xlane.f32.xlu0 %v345_v29  ;;  %v434_v30 = vpop.f32.mrf.mxu0 }
 0x2c4   :  { %v189_v31 = vpop.xlane.xlu1 %188 }
 0x2c5   :  { %448 = vrcp.f32 %v189_v31 }
 0x2d2   :  { %v449_v32 = vpop.eup %448 }
 0x2d3   :  { %v191_v33 = vmul.f32 %v449_v32, %v447_v26 }
 0x2d5   :  { %192 = vst.msk [vmem:[#allocation2] sm:$0xf] %vm180_vm3, %v191_v33 }
 0x301   :  { %v347_v34 = vpop.xlane.xlu0 %346 }
 0x302   :  { %v348_v35 = vsub.f32 %v341_v28, %v347_v34 }
 0x304   :  { %v349_v36 = vmul.f32 1.442695, %v348_v35 }
 0x306   :  { %450 = vpow2.f32 %v349_v36 }
 0x313   :  { %v451_v37 = vpop.eup %450 }
 0x314   :  { %v351_v38 = vsel %vm180_vm3, %v451_v37, 0.0 }
 0x315   :  { %352 = vadd.xlane.f32.xlu1 %v351_v38 }
 0x39e   :  { %v353_v39 = vpop.xlane.xlu1 %352 }
 0x39f   :  { %452 = vrcp.f32 %v353_v39 }
 0x3ac   :  { %v453_v40 = vpop.eup %452 }
 0x3ad   :  { %v355_v41 = vmul.f32 %v453_v40, %v451_v37 }
 0x3af   :  { %356 = vst.msk [vmem:[#allocation2 + $0x4] sm:$0xf] %vm180_vm3, %v355_v41 }
 0x3b0   :  { %465 = shalt.err (!%p462_p4)
}
 0x3b1   :  { %366 = dma.vmem_to_hbm [thread:$0]  %s364_s5, 128, %s550_s3, [#allocation3]  }
 0x3b2   :  { %474 = dma.done.wait [#allocation3], 128  }
 0x3b3   :  { %475 = vsyncadd [#allocation3], 4294967168 }
 0x3b4   :  { %370 = vsyncpa [#allocation3], 1 }

</bundles_post_ra>
